<compile_context>
chip_gen: v7x
topology: tpu7x:2x2x1
jax: 0.10.0
libtpu: 0.0.40
codegen_flags: <defaults>
</compile_context>

<pallas_src>
import functools
import math

import jax
import jax.numpy as jnp
from jax.experimental import pallas as pl
from jax.experimental.pallas import tpu as pltpu


def _cdiv(a, b):
    return -(-a // b)


def _round_up(a, b):
    return _cdiv(a, b) * b


def _int_pow(base, g: int):
    # Repeated multiplication keeps the work on the VPU (no exp/log on the EUP).
    if g == 0:
        return jnp.ones_like(base)
    r = base
    for _ in range(g - 1):
        r = r * base
    return r


def _binary_focal_kernel(x_ref, t_ref, o_ref, *, alpha, gamma, smooth):
    x = x_ref[...].astype(jnp.float32)      # [TM, LN] logits (f32 or bf16 in HBM)
    t = t_ref[...].astype(jnp.float32)      # [TM, LN] targets (int8 in HBM, pad=-1)

    # One exp + one log per element; everything else is derived from them.
    e = jnp.exp(-jnp.abs(x))                # exp(-|x|) in (0, 1]
    denom = 1.0 + e
    log_denom = jnp.log(denom)              # log(1 + exp(-|x|)) in (0, log 2]

    log_smooth = math.log(smooth)
    log_1m_smooth = math.log1p(-smooth)
    # log(clip(sigmoid(x), s, 1-s)) == clip(logsigmoid(x), log s, log(1-s))
    log_prob = jnp.clip(jnp.minimum(x, 0.0) - log_denom, log_smooth, log_1m_smooth)
    # F.logsigmoid(-x) == -softplus(x)  (reference leaves this one unclipped)
    log_sig_neg = -(jnp.maximum(x, 0.0) + log_denom)

    g = float(gamma)
    if g == int(g) and 0 <= int(g) <= 8:
        # Integer gamma: pow via VPU multiplies; needs the clamped probability.
        inv_denom = pl.reciprocal(denom)                       # EUP reciprocal
        prob = jnp.where(x >= 0.0, inv_denom, e * inv_denom)   # stable sigmoid
        prob = jnp.clip(prob, smooth, 1.0 - smooth)
        pos_w = _int_pow(1.0 - prob, int(g))
        neg_w = _int_pow(prob, int(g))
    else:
        # Fractional gamma: reuse the shared logs; one exp per weight, no extra log.
        log_1m_prob = jnp.clip(log_sig_neg, log_smooth, log_1m_smooth)
        pos_w = jnp.exp(g * log_1m_prob)
        neg_w = jnp.exp(g * log_prob)

    # Padded / garbage positions have t == -1 -> both branches select 0.0 exactly.
    loss = (jnp.where(t == 1.0, -pos_w * log_prob, 0.0)
            + jnp.where(t == 0.0, (-alpha) * neg_w * log_sig_neg, 0.0))

    # Sublane-preserving partial sum: pure vreg adds, lane-dense (8, LN) store.
    tm, ln = loss.shape
    o_ref[...] = jnp.sum(loss.reshape(tm // 8, 8, ln), axis=0)


def binary_focal_loss(output, target, *, alpha=1.0, gamma=2.0, smooth=1e-6,
                      lane_tile=512, row_tile=1024, interpret=False):
    output = jnp.asarray(output)
    target = jnp.asarray(target)

    # Map targets onto int8 {1, 0, -1} BEFORE broadcast/pad: keeps exact
    # (==1)/(==0) semantics, 1 byte/elem in HBM, pads contribute zero loss.
    t_i8 = jnp.where(target == 1, jnp.int8(1),
                     jnp.where(target == 0, jnp.int8(0), jnp.int8(-1)))
    t_i8 = jnp.expand_dims(t_i8, axis=1)                 # torch: target.unsqueeze(1)

    bshape = jnp.broadcast_shapes(output.shape, t_i8.shape)
    x = jnp.broadcast_to(output, bshape)                 # logits keep input dtype
    t = jnp.broadcast_to(t_i8, bshape)

    n = 1
    for d in bshape:
        n *= int(d)

    ln = lane_tile                                       # lane-dense (multiple of 128)
    rows = max(1, _cdiv(n, ln))
    # Row tile: multiple of 32 (int8 sublane packing; covers f32/bf16 too),
    # capped at row_tile, and small enough to keep >= ~4 grid steps (megacore).
    tm = min(row_tile, max(32, _round_up(_cdiv(rows, 4), 32)))
    rows_p = _round_up(rows, tm)
    grid = rows_p // tm
    n_pad = rows_p * ln

    xf = x.reshape(-1)
    tf = t.reshape(-1)
    if n_pad != n:                                       # no pre-pass when aligned
        xf = jnp.pad(xf, (0, n_pad - n))                             # logits pad -> 0
        tf = jnp.pad(tf, (0, n_pad - n), constant_values=-1)         # target pad -> no loss
    x2 = xf.reshape(rows_p, ln)
    t2 = tf.reshape(rows_p, ln)

    kernel = functools.partial(_binary_focal_kernel, alpha=float(alpha),
                               gamma=float(gamma), smooth=float(smooth))
    bytes_accessed = (x2.size * x2.dtype.itemsize
                      + t2.size * t2.dtype.itemsize
                      + grid * 8 * ln * 4)

    partials = pl.pallas_call(
        kernel,
        out_shape=jax.ShapeDtypeStruct((grid * 8, ln), jnp.float32),
        grid_spec=pltpu.PrefetchScalarGridSpec(
            num_scalar_prefetch=0,
            grid=(grid,),
            in_specs=[
                pl.BlockSpec((tm, ln), lambda i: (i, 0)),
                pl.BlockSpec((tm, ln), lambda i: (i, 0)),
            ],
            out_specs=pl.BlockSpec((8, ln), lambda i: (i, 0)),
        ),
        compiler_params=pltpu.CompilerParams(
            dimension_semantics=("parallel",)),
        cost_estimate=pl.CostEstimate(flops=25 * n_pad,
                                      transcendentals=3 * n_pad,
                                      bytes_accessed=bytes_accessed),
        interpret=interpret,
    )(x2, t2)

    # Tiny final reduce + mean in XLA (negligible vs the streamed pass).
    return jnp.sum(partials) / n


class BinaryFocalLossPallas:
    """JAX/Pallas TPU equivalent of the PyTorch BinaryFocalLoss module (forward)."""

    def __init__(self, alpha=1, gamma=2, reduction='mean', **kwargs):
        self.alpha = float(alpha)
        self.gamma = float(gamma)
        self.smooth = 1e-6
        self.reduction = reduction
        assert self.reduction in ['none', 'mean', 'sum']
        # NOTE: the reference forward() always applies .mean() regardless of
        # `reduction`; replicated exactly.

    def __call__(self, output, target):
        return binary_focal_loss(output, target, alpha=self.alpha,
                                 gamma=self.gamma, smooth=self.smooth)


def _reference(output, target, alpha=1.0, gamma=2.0, smooth=1e-6):
    prob = jnp.clip(jax.nn.sigmoid(output), smooth, 1.0 - smooth)
    t = jnp.expand_dims(target, axis=1)
    pos_mask = (t == 1).astype(jnp.float32)
    neg_mask = (t == 0).astype(jnp.float32)
    pos_loss = -pos_mask * jnp.power(1.0 - prob, gamma) * jnp.log(prob)
    neg_loss = -alpha * neg_mask * jnp.power(prob, gamma) * jax.nn.log_sigmoid(-output)
    return jnp.mean(pos_loss + neg_loss)


if __name__ == "__main__":
    key = jax.random.PRNGKey(0)
    k1, k2, k3, k4, k5, k6 = jax.random.split(key, 6)

    # Case 1: binary-segmentation logits [B, 1, H, W], float targets [B, H, W].
    B, C, H, W = 2, 1, 16, 16
    logits = 3.0 * jax.random.normal(k1, (B, C, H, W), dtype=jnp.float32)
    labels = (jax.random.uniform(k2, (B, H, W)) > 0.5).astype(jnp.float32)
    loss_fn = BinaryFocalLossPallas(alpha=1.0, gamma=2.0, reduction='mean')
    loss = jax.block_until_ready(loss_fn(logits, labels))
    ref = _reference(logits, labels, alpha=1.0, gamma=2.0)
    assert jnp.allclose(loss, ref, atol=1e-5, rtol=1e-5), (float(loss), float(ref))

    # Case 2: non-tile-aligned shape, channel broadcast, integer targets, gamma=3.
    logits2 = 2.0 * jax.random.normal(k3, (2, 3, 7, 9), dtype=jnp.float32)
    labels2 = jax.random.randint(k4, (2, 7, 9), 0, 2, dtype=jnp.int32)
    loss_fn2 = BinaryFocalLossPallas(alpha=0.75, gamma=3.0)
    loss2 = jax.block_until_ready(loss_fn2(logits2, labels2))
    ref2 = _reference(logits2, labels2.astype(jnp.float32), alpha=0.75, gamma=3.0)
    assert jnp.allclose(loss2, ref2, atol=1e-5, rtol=1e-5), (float(loss2), float(ref2))

    # Case 3: fractional gamma (shared-log EUP pow path), bf16 logits, grid > 1.
    logits3 = (2.0 * jax.random.normal(k5, (2, 2, 128, 64),
                                       dtype=jnp.float32)).astype(jnp.bfloat16)
    labels3 = (jax.random.uniform(k6, (2, 128, 64)) > 0.4).astype(jnp.float32)
    loss_fn3 = BinaryFocalLossPallas(alpha=0.5, gamma=1.7)
    loss3 = jax.block_until_ready(loss_fn3(logits3, labels3))
    ref3 = _reference(logits3.astype(jnp.float32), labels3, alpha=0.5, gamma=1.7)
    assert jnp.allclose(loss3, ref3, atol=2e-5, rtol=2e-5), (float(loss3), float(ref3))

    print("KERNEL_OK")
</pallas_src>

<mosaic_0001>
module attributes {stable_mosaic.version = 11 : i64} {
  func.func @_binary_focal_kernel(%arg0: i32, %arg1: memref<32x512xf32, #tpu.memory_space<vmem>>, %arg2: memref<32x512xi8, #tpu.memory_space<vmem>>, %arg3: memref<8x512xf32, #tpu.memory_space<vmem>>) attributes {dimension_semantics = [#tpu.dimension_semantics<parallel>], iteration_bounds = array<i64: 1>, scalar_prefetch = 0 : i64, scratch_operands = 0 : i64, tpu.core_type = #tpu.core_type<tc>, window_params = [{transform_indices = @transform_0, window_bounds = array<i64: 32, 512>}, {transform_indices = @transform_1, window_bounds = array<i64: 32, 512>}, {transform_indices = @transform_2, window_bounds = array<i64: 8, 512>}]} {
    %c0 = arith.constant 0 : index
    %c0_0 = arith.constant 0 : index
    %0 = vector.load %arg1[%c0, %c0_0] : memref<32x512xf32, #tpu.memory_space<vmem>>, vector<32x512xf32>
    %c0_1 = arith.constant 0 : index
    %c0_2 = arith.constant 0 : index
    %1 = vector.load %arg2[%c0_1, %c0_2] : memref<32x512xi8, #tpu.memory_space<vmem>>, vector<32x512xi8>
    %2 = arith.sitofp %1 : vector<32x512xi8> to vector<32x512xf32>
    %3 = math.absf %0 : vector<32x512xf32>
    %cst = arith.constant 0.000000e+00 : f32
    %4 = vector.broadcast %cst : f32 to vector<32x512xf32>
    %5 = arith.subf %4, %3 : vector<32x512xf32>
    %6 = math.exp %5 : vector<32x512xf32>
    %cst_3 = arith.constant 1.000000e+00 : f32
    %7 = vector.broadcast %cst_3 : f32 to vector<32x512xf32>
    %8 = arith.addf %7, %6 : vector<32x512xf32>
    %9 = math.log %8 : vector<32x512xf32>
    %cst_4 = arith.constant 0.000000e+00 : f32
    %10 = vector.broadcast %cst_4 : f32 to vector<32x512xf32>
    %11 = arith.minimumf %0, %10 : vector<32x512xf32>
    %12 = arith.subf %11, %9 : vector<32x512xf32>
    %cst_5 = arith.constant -13.8155107 : f32
    %cst_6 = arith.constant -1.00000045E-6 : f32
    %13 = vector.broadcast %cst_5 : f32 to vector<32x512xf32>
    %14 = arith.maximumf %13, %12 : vector<32x512xf32>
    %15 = vector.broadcast %cst_6 : f32 to vector<32x512xf32>
    %16 = arith.minimumf %15, %14 : vector<32x512xf32>
    %cst_7 = arith.constant 0.000000e+00 : f32
    %17 = vector.broadcast %cst_7 : f32 to vector<32x512xf32>
    %18 = arith.maximumf %0, %17 : vector<32x512xf32>
    %19 = arith.addf %18, %9 : vector<32x512xf32>
    %cst_8 = arith.constant 0.000000e+00 : f32
    %20 = vector.broadcast %cst_8 : f32 to vector<32x512xf32>
    %21 = arith.subf %20, %19 : vector<32x512xf32>
    %22 = tpu.reciprocal %8 : vector<32x512xf32> -> vector<32x512xf32>
    %cst_9 = arith.constant 0.000000e+00 : f32
    %23 = vector.broadcast %cst_9 : f32 to vector<32x512xf32>
    %24 = arith.cmpf oge, %0, %23 : vector<32x512xf32>
    %25 = arith.mulf %6, %22 : vector<32x512xf32>
    %26 = arith.select %24, %22, %25 : vector<32x512xi1>, vector<32x512xf32>
    %cst_10 = arith.constant 9.99999997E-7 : f32
    %cst_11 = arith.constant 0.999998986 : f32
    %27 = vector.broadcast %cst_10 : f32 to vector<32x512xf32>
    %28 = arith.maximumf %27, %26 : vector<32x512xf32>
    %29 = vector.broadcast %cst_11 : f32 to vector<32x512xf32>
    %30 = arith.minimumf %29, %28 : vector<32x512xf32>
    %cst_12 = arith.constant 1.000000e+00 : f32
    %31 = vector.broadcast %cst_12 : f32 to vector<32x512xf32>
    %32 = arith.subf %31, %30 : vector<32x512xf32>
    %33 = arith.mulf %32, %32 : vector<32x512xf32>
    %34 = arith.mulf %30, %30 : vector<32x512xf32>
    %cst_13 = arith.constant 1.000000e+00 : f32
    %35 = vector.broadcast %cst_13 : f32 to vector<32x512xf32>
    %36 = arith.cmpf oeq, %2, %35 : vector<32x512xf32>
    %cst_14 = arith.constant 0.000000e+00 : f32
    %37 = vector.broadcast %cst_14 : f32 to vector<32x512xf32>
    %38 = arith.subf %37, %33 : vector<32x512xf32>
    %39 = arith.mulf %38, %16 : vector<32x512xf32>
    %cst_15 = arith.constant 0.000000e+00 : f32
    %40 = vector.broadcast %cst_15 : f32 to vector<32x512xf32>
    %41 = arith.select %36, %39, %40 : vector<32x512xi1>, vector<32x512xf32>
    %cst_16 = arith.constant 0.000000e+00 : f32
    %42 = vector.broadcast %cst_16 : f32 to vector<32x512xf32>
    %43 = arith.cmpf oeq, %2, %42 : vector<32x512xf32>
    %cst_17 = arith.constant -1.000000e+00 : f32
    %44 = vector.broadcast %cst_17 : f32 to vector<32x512xf32>
    %45 = arith.mulf %44, %34 : vector<32x512xf32>
    %46 = arith.mulf %45, %21 : vector<32x512xf32>
    %cst_18 = arith.constant 0.000000e+00 : f32
    %47 = vector.broadcast %cst_18 : f32 to vector<32x512xf32>
    %48 = arith.select %43, %46, %47 : vector<32x512xi1>, vector<32x512xf32>
    %49 = arith.addf %41, %48 : vector<32x512xf32>
    %50 = vector.shape_cast %49 : vector<32x512xf32> to vector<4x8x512xf32>
    %cst_19 = arith.constant dense<0.000000e+00> : vector<8x512xf32>
    %51 = vector.multi_reduction <add>, %50, %cst_19 [0] : vector<4x8x512xf32> to vector<8x512xf32>
    %c0_20 = arith.constant 0 : index
    %c0_21 = arith.constant 0 : index
    %52 = vector.load %arg3[%c0_20, %c0_21] : memref<8x512xf32, #tpu.memory_space<vmem>>, vector<8x512xf32>
    tpu.vector_store %arg3[%c0_20, %c0_21], %51 {strides = array<i32>} : memref<8x512xf32, #tpu.memory_space<vmem>>, vector<8x512xf32>,
    return
  }
  func.func @transform_0(%arg0: i32) -> (i32, i32) {
    %c0_i32 = arith.constant 0 : i32
    %c0_i32_0 = arith.constant 0 : i32
    return %arg0, %c0_i32 : i32, i32
  }
  func.func @transform_1(%arg0: i32) -> (i32, i32) {
    %c0_i32 = arith.constant 0 : i32
    %c0_i32_0 = arith.constant 0 : i32
    return %arg0, %c0_i32 : i32, i32
  }
  func.func @transform_2(%arg0: i32) -> (i32, i32) {
    %c0_i32 = arith.constant 0 : i32
    %c0_i32_0 = arith.constant 0 : i32
    return %arg0, %c0_i32 : i32, i32
  }
}

</mosaic_0001>

<bundles_post_ra>
// kernel: tpu_custom_call.1
= control target key start
LH: loop header
LB: loop body
LE: loop exit
PB: predicated region body
PF: predicated region fallthrough
CT: control target
= control target key end

     0   :  { %7 = vsyncpa [#allocation3], 0  ;;  %s1681_s0 = inlined_call_operand.hbm [shape: f32[32,512], index: 0, kind: input, shape index: {}]   ;;  %s1682_s1 = inlined_call_operand.hbm [shape: s8[32,512], index: 1, kind: input, shape index: {}]   ;;  %s1683_s2 = inlined_call_operand.hbm [shape: f32[8,512], index: 2, kind: output, shape index: {}]  }
   0x1   :  { %8 = vsyncpa [#allocation6], 0 }
   0x2   :  { %9 = vsyncpa [#allocation4], 0  ;;  %s807_s9 = smov [#allocation2]   ;;  %s735_s13 = scalar_lea.hbm %s1681_s0, 2048 }
   0x3   :  { %s15_s10 = sshll.u32 %s807_s9, 4  ;;  %p736_p0 = scmp.ne.s32.totalorder %s1681_s0, %s735_s13  ;;  %s16_s10 = int_to_ptr.vmem [resolvable:$true] %s15_s10 }
   0x4   :  { %p739_p1 = scmp.lt.u32.totalorder %s735_s13, %s1681_s0 }
   0x6   :  { %p741_p2 = pnand %p739_p1, %p736_p0 }
   0x8   :  { %744 = shalt.err (!%p741_p2)
}
   0x9   :  { %s745_s18 = scalar_lea.vmem %s16_s10, 2048  ;;  %p750_p4 = scmp.lt.s32.totalorder %s16_s10, %s16_s10 }
   0xa   :  { %p746_p3 = scmp.ne.s32.totalorder %s16_s10, %s745_s18  ;;  %p751_p5 = scmp.lt.s32.totalorder %s745_s18, %s745_s18 }
   0xc   :  { %p752_p6 = por %p751_p5, %p750_p4 }
   0xe   :  { %p753_p7 = pnand %p752_p6, %p746_p3 }
  0x10   :  { %756 = shalt.err (!%p753_p7)
}
  0x11   :  { %s808_s19 = smov 512   ;;  %s809_s20 = smov 32  }
  0x12   :  { %21 = dma.hbm_to_vmem [thread:$0]  %s1681_s0, 2048, %s16_s10, [#allocation3], %s808_s19, %s808_s19, %s809_s20  }
  0x13   :  { %s810_s23 = smov [#allocation5]   ;;  %s757_s27 = scalar_lea.hbm %s1682_s1, 512 }
  0x14   :  { %s28_s24 = sshll.u32 %s810_s23, 4  ;;  %p758_p8 = scmp.ne.s32.totalorder %s1682_s1, %s757_s27  ;;  %s29_s24 = int_to_ptr.vmem [resolvable:$true] %s28_s24 }
  0x15   :  { %p761_p9 = scmp.lt.u32.totalorder %s757_s27, %s1682_s1 }
  0x17   :  { %p763_p10 = pnand %p761_p9, %p758_p8 }
  0x19   :  { %766 = shalt.err (!%p763_p10)
}
  0x1a   :  { %s767_s4 = scalar_lea.vmem %s29_s24, 512  ;;  %p772_p12 = scmp.lt.s32.totalorder %s29_s24, %s29_s24 }
  0x1b   :  { %p768_p11 = scmp.ne.s32.totalorder %s29_s24, %s767_s4  ;;  %p773_p13 = scmp.lt.s32.totalorder %s767_s4, %s767_s4 }
  0x1d   :  { %p774_p0 = por %p773_p13, %p772_p12 }
  0x1f   :  { %p775_p1 = pnand %p774_p0, %p768_p11 }
  0x21   :  { %778 = shalt.err (!%p775_p1)
}
  0x22   :  { %31 = dma.hbm_to_vmem [thread:$0]  %s1682_s1, 512, %s29_s24, [#allocation6]  }
  0x23   :  { %801 = dma.done.wait [#allocation3], 2048  }
  0x24   :  { %802 = vsyncadd [#allocation3], 4294965248 }
  0x25   :  { %803 = dma.done.wait [#allocation6], 512  }
  0x26   :  { %804 = vsyncadd [#allocation6], 4294966784  ;;  %v851_v0 = vld [vmem:[#allocation2] sm:$0xff]  ;;  %v853_v1 = vld [vmem:[#allocation2 + $0x8] sm:$0xff]  ;;  %s811_s1 = smov [#allocation7]  }
  0x27   :  { %v855_v2 = vld [vmem:[#allocation2 + $0x10] sm:$0xff]  ;;  %v857_v3 = vld [vmem:[#allocation2 + $0x18] sm:$0xff]  ;;  %v90_v4 = vand.u32 2147483647, %v851_v0  ;;  %v860_v5 = vld [vmem:[#allocation2 + $0x20] sm:$0xff]  ;;  %vm330_vm0 = vcmp.ge.f32.partialorder %v851_v0, 0.0 }
  0x28   :  { %v91_v6 = vand.u32 2147483647, %v853_v1  ;;  %v863_v7 = vld [vmem:[#allocation2 + $0x28] sm:$0xff]  ;;  %v92_v8 = vand.u32 2147483647, %v855_v2  ;;  %v866_v9 = vld [vmem:[#allocation2 + $0x30] sm:$0xff] }
  0x29   :  { %v93_v10 = vand.u32 2147483647, %v857_v3  ;;  %v869_v11 = vld [vmem:[#allocation2 + $0x38] sm:$0xff]  ;;  %v94_v12 = vand.u32 2147483647, %v860_v5  ;;  %v106_v13 = vsub.f32 0.0, %v90_v4 }
  0x2a   :  { %v872_v14 = vld [vmem:[#allocation2 + $0x40] sm:$0xff]  ;;  %v95_v15 = vand.u32 2147483647, %v863_v7  ;;  %v107_v16 = vsub.f32 0.0, %v91_v6  ;;  %v875_v17 = vld [vmem:[#allocation2 + $0x48] sm:$0xff]  ;;  %v108_v19 = vsub.f32 0.0, %v92_v8 }
  0x2b   :  { %v96_v18 = vand.u32 2147483647, %v866_v9  ;;  %v878_v20 = vld [vmem:[#allocation2 + $0x50] sm:$0xff]  ;;  %v97_v21 = vand.u32 2147483647, %v869_v11  ;;  %v109_v22 = vsub.f32 0.0, %v93_v10 }
  0x2c   :  { %v881_v23 = vld [vmem:[#allocation2 + $0x58] sm:$0xff]  ;;  %v98_v24 = vand.u32 2147483647, %v872_v14  ;;  %v110_v25 = vsub.f32 0.0, %v94_v12  ;;  %v122_v26 = vmul.f32 1.442695, %v106_v13 }
  0x2d   :  { %v884_v27 = vld [vmem:[#allocation2 + $0x60] sm:$0xff]  ;;  %v99_v28 = vand.u32 2147483647, %v875_v17  ;;  %v111_v29 = vsub.f32 0.0, %v95_v15  ;;  %v124_v30 = vmul.f32 1.442695, %v107_v16 }
  0x2e   :  { %v887_v31 = vld [vmem:[#allocation2 + $0x68] sm:$0xff]  ;;  %v100_v32 = vand.u32 2147483647, %v878_v20  ;;  %v112_v33 = vsub.f32 0.0, %v96_v18  ;;  %v126_v34 = vmul.f32 1.442695, %v108_v19  ;;  %639 = vpow2.f32 %v122_v26 }
  0x2f   :  { %v890_v35 = vld [vmem:[#allocation2 + $0x70] sm:$0xff]  ;;  %v101_v36 = vand.u32 2147483647, %v881_v23  ;;  %v113_v37 = vsub.f32 0.0, %v97_v21  ;;  %v128_v38 = vmul.f32 1.442695, %v109_v22  ;;  %641 = vpow2.f32 %v124_v30 }
  0x30   :  { %v893_v39 = vld [vmem:[#allocation2 + $0x78] sm:$0xff]  ;;  %v102_v40 = vand.u32 2147483647, %v884_v27  ;;  %v114_v41 = vsub.f32 0.0, %v98_v24  ;;  %v130_v42 = vmul.f32 1.442695, %v110_v25  ;;  %643 = vpow2.f32 %v126_v34 }
  0x31   :  { %v103_v43 = vand.u32 2147483647, %v887_v31  ;;  %v115_v44 = vsub.f32 0.0, %v99_v28  ;;  %v132_v45 = vmul.f32 1.442695, %v111_v29  ;;  %v116_v47 = vsub.f32 0.0, %v100_v32 }
  0x32   :  { %v104_v46 = vand.u32 2147483647, %v890_v35  ;;  %v134_v48 = vmul.f32 1.442695, %v112_v33  ;;  %v105_v49 = vand.u32 2147483647, %v893_v39  ;;  %645 = vpow2.f32 %v128_v38 }
  0x33   :  { %v117_v50 = vsub.f32 0.0, %v101_v36  ;;  %v136_v51 = vmul.f32 1.442695, %v113_v37  ;;  %v118_v52 = vsub.f32 0.0, %v102_v40  ;;  %647 = vpow2.f32 %v130_v42  ;;  %v899_v61 = vld [vmem:[#allocation5] sm:$0xff]  ;;  %v901_v62 = vld [vmem:[#allocation5 + $0x8] sm:$0xff] }
  0x34   :  { %v138_v53 = vmul.f32 1.442695, %v114_v41  ;;  %v119_v54 = vsub.f32 0.0, %v103_v43  ;;  %649 = vpow2.f32 %v132_v45  ;;  %v140_v55 = vmul.f32 1.442695, %v115_v44  ;;  %v905_v6 = vld [vmem:[#allocation5 + $0x10] sm:$0xff] }
  0x35   :  { %v120_v56 = vsub.f32 0.0, %v104_v46  ;;  %651 = vpow2.f32 %v134_v48  ;;  %v142_v57 = vmul.f32 1.442695, %v116_v47  ;;  %v121_v58 = vsub.f32 0.0, %v105_v49  ;;  %v907_v8 = vld [vmem:[#allocation5 + $0x18] sm:$0xff]  ;;  %s624_s6 = sshll.u32 %s811_s1, 4  ;;  %s625_s6 = int_to_ptr.vmem [resolvable:$true] %s624_s6 }
  0x36   :  { %653 = vpow2.f32 %v136_v51  ;;  %v144_v59 = vmul.f32 1.442695, %v117_v50  ;;  %v146_v60 = vmul.f32 1.442695, %v118_v52  ;;  %v148_v63 = vmul.f32 1.442695, %v119_v54  ;;  %p784_p3 = scmp.lt.s32.totalorder %s625_s6, %s625_s6 }
  0x37   :  { %655 = vpow2.f32 %v138_v53  ;;  %v150_v10 = vmul.f32 1.442695, %v120_v56  ;;  %v152_v13 = vmul.f32 1.442695, %v121_v58  ;;  %v58_v19 = vunpack.c.0.s8 %v899_v61  ;;  %s779_s7 = scalar_lea.vmem %s625_s6, 512 }
  0x38   :  { %657 = vpow2.f32 %v140_v55  ;;  %v903_v4 = vpop.eup %639  ;;  %v59_v21 = vunpack.c.0.s8 %v901_v62  ;;  %v62_v22 = vunpack.c.1.s8 %v899_v61  ;;  %v60_v25 = vunpack.c.0.s8 %v905_v6  ;;  %p780_p2 = scmp.ne.s32.totalorder %s625_s6, %s779_s7  ;;  %p785_p4 = scmp.lt.s32.totalorder %s779_s7, %s779_s7 }
  0x39   :  { %1742 = vst [vmem:[#allocation11_spill] sm:$0xff] %v903_v4  ;;  %659 = vpow2.f32 %v142_v57  ;;  %v909_v12 = vpop.eup %641  ;;  %v61_v26 = vunpack.c.0.s8 %v907_v8  ;;  %v63_v28 = vunpack.c.1.s8 %v901_v62  ;;  %v64_v30 = vunpack.c.1.s8 %v905_v6 }
  0x3a   :  { %1743 = vst [vmem:[#allocation12_spill] sm:$0xff] %v909_v12  ;;  %661 = vpow2.f32 %v144_v59  ;;  %v913_v18 = vpop.eup %643  ;;  %v65_v32 = vunpack.c.1.s8 %v907_v8  ;;  %v928_v33 = vadd.f32 1.0, %v903_v4  ;;  %v66_v36 = vunpack.c.2.s8 %v899_v61  ;;  %p786_p5 = por %p785_p4, %p784_p3 }
  0x3b   :  { %1744 = vst [vmem:[#allocation13_spill] sm:$0xff] %v913_v18  ;;  %663 = vpow2.f32 %v146_v60  ;;  %v67_v37 = vunpack.c.2.s8 %v901_v62  ;;  %v935_v38 = vadd.f32 1.0, %v909_v12  ;;  %v68_v41 = vunpack.c.2.s8 %v905_v6 }
  0x3c   :  { %v918_v24 = vpop.eup %645  ;;  %665 = vpow2.f32 %v148_v63  ;;  %v69_v42 = vunpack.c.2.s8 %v907_v8  ;;  %v942_v43 = vadd.f32 1.0, %v913_v18  ;;  %v70_v45 = vunpack.c.3.s8 %v899_v61  ;;  %p787_p6 = pnand %p786_p5, %p780_p2 }
  0x3d   :  { %1745 = vst [vmem:[#allocation14_spill] sm:$0xff] %v918_v24  ;;  %v923_v29 = vpop.eup %647  ;;  %667 = vpow2.f32 %v150_v10  ;;  %v71_v46 = vunpack.c.3.s8 %v901_v62  ;;  %v950_v47 = vadd.f32 1.0, %v918_v24  ;;  %v72_v49 = vunpack.c.3.s8 %v905_v6 }
  0x3e   :  { %1746 = vst [vmem:[#allocation15_spill] sm:$0xff] %v923_v29  ;;  %v930_v34 = vpop.eup %649  ;;  %669 = vpow2.f32 %v152_v13  ;;  %v73_v50 = vunpack.c.3.s8 %v907_v8  ;;  %v958_v51 = vadd.f32 1.0, %v923_v29  ;;  %v963_v53 = vcvt.s32.f32 %v58_v19 }
  0x3f   :  { %1747 = vst [vmem:[#allocation16_spill] sm:$0xff] %v930_v34  ;;  %v937_v40 = vpop.eup %651  ;;  %671 = vlog2.f32 %v928_v33  ;;  %v965_v54 = vcvt.s32.f32 %v59_v21  ;;  %v968_v55 = vadd.f32 1.0, %v930_v34  ;;  %v973_v57 = vcvt.s32.f32 %v60_v25 }
  0x40   :  { %1748 = vst [vmem:[#allocation17_spill] sm:$0xff] %v937_v40  ;;  %v945_v44 = vpop.eup %653  ;;  %673 = vlog2.f32 %v935_v38  ;;  %1752 = vst [vmem:[#allocation21_spill] sm:$0xff] %v963_v53  ;;  %v975_v58 = vcvt.s32.f32 %v61_v26  ;;  %v978_v59 = vadd.f32 1.0, %v937_v40  ;;  %v983_v61 = vcvt.s32.f32 %v62_v22 }
  0x41   :  { %1749 = vst [vmem:[#allocation18_spill] sm:$0xff] %v945_v44  ;;  %v953_v48 = vpop.eup %655  ;;  %675 = vlog2.f32 %v942_v43  ;;  %1753 = vst [vmem:[#allocation22_spill] sm:$0xff] %v965_v54  ;;  %v985_v62 = vcvt.s32.f32 %v63_v28  ;;  %v988_v63 = vadd.f32 1.0, %v945_v44  ;;  %v993_v8 = vcvt.s32.f32 %v64_v30 }
  0x42   :  { %1750 = vst [vmem:[#allocation19_spill] sm:$0xff] %v953_v48  ;;  %v961_v52 = vpop.eup %657  ;;  %677 = vlog2.f32 %v950_v47  ;;  %1755 = vst [vmem:[#allocation24_spill] sm:$0xff] %v973_v57  ;;  %v995_v10 = vcvt.s32.f32 %v65_v32  ;;  %v998_v13 = vadd.f32 1.0, %v953_v48  ;;  %v1003_v21 = vcvt.s32.f32 %v66_v36 }
  0x43   :  { %1751 = vst [vmem:[#allocation20_spill] sm:$0xff] %v961_v52  ;;  %v971_v56 = vpop.eup %659  ;;  %1756 = vst [vmem:[#allocation25_spill] sm:$0xff] %v975_v58  ;;  %679 = vlog2.f32 %v958_v51  ;;  %v1005_v22 = vcvt.s32.f32 %v67_v37  ;;  %v1008_v25 = vadd.f32 1.0, %v961_v52  ;;  %v1013_v28 = vcvt.s32.f32 %v68_v41 }
  0x44   :  { %1754 = vst [vmem:[#allocation23_spill] sm:$0xff] %v971_v56  ;;  %1757 = vst [vmem:[#allocation26_spill] sm:$0xff] %v978_v59  ;;  %v981_v60 = vpop.eup %661  ;;  %681 = vlog2.f32 %v968_v55  ;;  %v1015_v30 = vcvt.s32.f32 %v69_v42  ;;  %v1018_v32 = vadd.f32 1.0, %v971_v56  ;;  %v1023_v37 = vcvt.s32.f32 %v70_v45 }
  0x45   :  { %1758 = vst [vmem:[#allocation27_spill] sm:$0xff] %v981_v60  ;;  %1759 = vst [vmem:[#allocation28_spill] sm:$0xff] %v983_v61  ;;  %v991_v6 = vpop.eup %663  ;;  %683 = vlog2.f32 %v978_v59  ;;  %v1025_v16 = vcvt.s32.f32 %v71_v46  ;;  %v1028_v15 = vadd.f32 1.0, %v981_v60  ;;  %v1033_v42 = vcvt.s32.f32 %v73_v50 }
  0x46   :  { %1760 = vst [vmem:[#allocation29_spill] sm:$0xff] %v985_v62  ;;  %1761 = vst [vmem:[#allocation30_spill] sm:$0xff] %v988_v63  ;;  %v1001_v19 = vpop.eup %665  ;;  %685 = vlog2.f32 %v988_v63  ;;  %v204_v46 = vmin.f32 %v855_v2, 0.0  ;;  %v206_v50 = vmin.f32 %v860_v5, 0.0  ;;  %v210_v62 = vmin.f32 %v872_v14, 0.0 }
  0x47   :  { %1762 = vst [vmem:[#allocation31_spill] sm:$0xff] %v991_v6  ;;  %1763 = vst [vmem:[#allocation32_spill] sm:$0xff] %v993_v8  ;;  %v1011_v26 = vpop.eup %667  ;;  %687 = vlog2.f32 %v998_v13  ;;  %v1040_v45 = vadd.f32 1.0, %v1001_v19  ;;  %v211_v61 = vmin.f32 %v875_v17, 0.0  ;;  %v212_v58 = vmin.f32 %v878_v20, 0.0 }
  0x48   :  { %1764 = vst [vmem:[#allocation33_spill] sm:$0xff] %v995_v10  ;;  %1765 = vst [vmem:[#allocation34_spill] sm:$0xff] %v998_v13  ;;  %v1021_v36 = vpop.eup %669  ;;  %689 = vlog2.f32 %v1008_v25  ;;  %v208_v10 = vmin.f32 %v866_v9, 0.0  ;;  %v213_v57 = vmin.f32 %v881_v23, 0.0  ;;  %vm331_vm1 = vcmp.ge.f32.partialorder %v853_v1, 0.0 }
  0x49   :  { %1766 = vst [vmem:[#allocation35_spill] sm:$0xff] %v1001_v19  ;;  %1767 = vst [vmem:[#allocation36_spill] sm:$0xff] %v1003_v21  ;;  %v672_v41 = vpop.eup %671  ;;  %691 = vlog2.f32 %v1018_v32  ;;  %v1052_v21 = vadd.f32 1.0, %v1021_v36  ;;  %vm332_vm2 = vcmp.ge.f32.partialorder %v855_v2, 0.0  ;;  %vm333_vm3 = vcmp.ge.f32.partialorder %v857_v3, 0.0 }
  0x4a   :  { %1768 = vst [vmem:[#allocation37_spill] sm:$0xff] %v1005_v22  ;;  %1769 = vst [vmem:[#allocation38_spill] sm:$0xff] %v1008_v25  ;;  %v674_v22 = vpop.eup %673  ;;  %693 = vlog2.f32 %v1028_v15  ;;  %v171_v52 = vmul.f32 0.6931472, %v672_v41  ;;  %v1784_v41 = vmin.f32 %v851_v0, 0.0  ;;  %vm334_vm4 = vcmp.ge.f32.partialorder %v860_v5, 0.0 }
  0x4b   :  { %1770 = vst [vmem:[#allocation39_spill] sm:$0xff] %v1011_v26  ;;  %1771 = vst [vmem:[#allocation40_spill] sm:$0xff] %v1013_v28  ;;  %v1031_v28 = vcvt.s32.f32 %v72_v49  ;;  %v1046_v49 = vadd.f32 1.0, %v1011_v26  ;;  %v1072_v34 = vmul.f32 0.6931472, %v674_v22  ;;  %vm335_vm5 = vcmp.ge.f32.partialorder %v863_v7, 0.0 }
  0x4c   :  { %1772 = vst [vmem:[#allocation41_spill] sm:$0xff] %v1015_v30  ;;  %1773 = vst [vmem:[#allocation42_spill] sm:$0xff] %v1018_v32  ;;  %v1036_v30 = vadd.f32 1.0, %v991_v6  ;;  %v266_v6 = vmax.f32 %v851_v0, 0.0  ;;  %vm336_vm6 = vcmp.ge.f32.partialorder %v866_v9, 0.0  ;;  %vm337_vm7 = vcmp.ge.f32.partialorder %v869_v11, 0.0 }
  0x4d   :  { %1774 = vst [vmem:[#allocation43_spill] sm:$0xff] %v1021_v36  ;;  %1775 = vst [vmem:[#allocation44_spill] sm:$0xff] %v1023_v37  ;;  %v676_v37 = vpop.eup %675  ;;  %vm338_vm8 = vcmp.ge.f32.partialorder %v872_v14, 0.0  ;;  %vm339_vm9 = vcmp.ge.f32.partialorder %v875_v17, 0.0  ;;  %vm340_vm10 = vcmp.ge.f32.partialorder %v878_v20, 0.0  ;;  %vm341_vm11 = vcmp.ge.f32.partialorder %v881_v23, 0.0 }
  0x4e   :  { %1776 = vst [vmem:[#allocation45_spill] sm:$0xff] %v1025_v16  ;;  %1777 = vst [vmem:[#allocation46_spill] sm:$0xff] %v1028_v15  ;;  %695 = vlog2.f32 %v1036_v30  ;;  %v209_v16 = vmin.f32 %v869_v11, 0.0  ;;  %v1115_v4 = vadd.f32 %v266_v6, %v171_v52  ;;  %vm342_vm12 = vcmp.ge.f32.partialorder %v884_v27, 0.0 }
  0x4f   :  { %1778 = vst [vmem:[#allocation47_spill] sm:$0xff] %v1031_v28  ;;  %1779 = vst [vmem:[#allocation48_spill] sm:$0xff] %v1033_v42  ;;  %v678_v28 = vpop.eup %677  ;;  %697 = vlog2.f32 %v1040_v45  ;;  %vm343_vm13 = vcmp.ge.f32.partialorder %v887_v31, 0.0  ;;  %vm344_vm14 = vcmp.ge.f32.partialorder %v890_v35, 0.0  ;;  %vm345_vm15 = vcmp.ge.f32.partialorder %v893_v39, 0.0 }
  0x50   :  { %1780 = vst [vmem:[#allocation49_spill] sm:$0xff] %v1036_v30  ;;  %1781 = vst [vmem:[#allocation50_spill] sm:$0xff] %v1040_v45  ;;  %v680_v8 = vpop.eup %679  ;;  %699 = vlog2.f32 %v1046_v49  ;;  %v1082_v40 = vmul.f32 0.6931472, %v678_v28 }
  0x51   :  { %1782 = vst [vmem:[#allocation51_spill] sm:$0xff] %v1046_v49  ;;  %1783 = vst [vmem:[#allocation52_spill] sm:$0xff] %v1052_v21  ;;  %v682_v42 = vpop.eup %681  ;;  %701 = vlog2.f32 %v1052_v21  ;;  %v1077_v21 = vmul.f32 0.6931472, %v676_v37  ;;  %v1084_v22 = vmul.f32 0.6931472, %v680_v8  ;;  %v218_v49 = vsub.f32 %v1784_v41, %v171_v52 }
  0x52   :  { %v684_v36 = vpop.eup %683  ;;  %v1088_v19 = vmul.f32 0.6931472, %v682_v42  ;;  %v1785_v8 = vmin.f32 %v853_v1, 0.0  ;;  %1787 = vst [vmem:[#allocation53_spill] sm:$0xff] %v1115_v4  ;;  %703 = vrcp.f32 %v928_v33  ;;  %v1802_v33 = vmax.f32 %v863_v7, 0.0 }
  0x53   :  { %v686_v56 = vpop.eup %685  ;;  %v1090_v37 = vmul.f32 0.6931472, %v684_v36  ;;  %v220_v41 = vsub.f32 %v204_v46, %v1077_v21  ;;  %v234_v15 = vmax.f32 %v218_v49, -13.815511  ;;  %705 = vrcp.f32 %v935_v38 }
  0x54   :  { %v688_v54 = vpop.eup %687  ;;  %v1095_v18 = vmul.f32 0.6931472, %v686_v56  ;;  %v219_v53 = vsub.f32 %v1785_v8, %v1072_v34  ;;  %v222_v8 = vsub.f32 %v206_v50, %v1084_v22  ;;  %707 = vrcp.f32 %v942_v43 }
  0x55   :  { %v690_v29 = vpop.eup %689  ;;  %v1097_v28 = vmul.f32 0.6931472, %v688_v54  ;;  %v1786_v54 = vmin.f32 %v857_v3, 0.0  ;;  %v224_v48 = vsub.f32 %v208_v10, %v1090_v37  ;;  %v236_v6 = vmax.f32 %v220_v41, -13.815511 }
  0x56   :  { %v692_v60 = vpop.eup %691  ;;  %v1103_v45 = vmul.f32 0.6931472, %v690_v29  ;;  %v225_v32 = vsub.f32 %v209_v16, %v1095_v18  ;;  %v235_v25 = vmax.f32 %v219_v53, -13.815511  ;;  %v238_v4 = vmax.f32 %v222_v8, -13.815511 }
  0x57   :  { %v694_v24 = vpop.eup %693  ;;  %v1105_v36 = vmul.f32 0.6931472, %v692_v60  ;;  %v221_v30 = vsub.f32 %v1786_v54, %v1082_v40  ;;  %v1788_v60 = vmin.f32 %v863_v7, 0.0  ;;  %v226_v54 = vsub.f32 %v210_v62, %v1097_v28 }
  0x58   :  { %v696_v44 = vpop.eup %695  ;;  %v1109_v56 = vmul.f32 0.6931472, %v694_v24  ;;  %v227_v52 = vsub.f32 %v211_v61, %v1103_v45  ;;  %v1789_v10 = vmin.f32 %v884_v27, 0.0  ;;  %v240_v16 = vmax.f32 %v224_v48, -13.815511 }
  0x59   :  { %v698_v42 = vpop.eup %697  ;;  %v1117_v29 = vmul.f32 0.6931472, %v696_v44  ;;  %v223_v46 = vsub.f32 %v1788_v60, %v1088_v19  ;;  %v228_v44 = vsub.f32 %v212_v58, %v1105_v36  ;;  %v237_v60 = vmax.f32 %v221_v30, -13.815511 }
  0x5a   :  { %v700_v12 = vpop.eup %699  ;;  %v1123_v24 = vmul.f32 0.6931472, %v698_v42  ;;  %v229_v63 = vsub.f32 %v213_v57, %v1109_v56  ;;  %v1133_v59 = vmin.f32 %v234_v15, -1.0000005e-06  ;;  %v241_v61 = vmax.f32 %v225_v32, -13.815511 }
  0x5b   :  { %v702_v26 = vpop.eup %701  ;;  %v199_v50 = vmul.f32 0.6931472, %v700_v12  ;;  %v230_v49 = vsub.f32 %v1789_v10, %v1117_v29  ;;  %v239_v42 = vmax.f32 %v223_v46, -13.815511  ;;  %v1791_v12 = vmin.f32 %v887_v31, 0.0 }
  0x5c   :  { %v201_v13 = vmul.f32 0.6931472, %v702_v26  ;;  %1790 = vst [vmem:[#allocation54_spill] sm:$0xff] %v1133_v59  ;;  %v242_v58 = vmax.f32 %v226_v54, -13.815511  ;;  %v1792_v57 = vmin.f32 %v890_v35, 0.0  ;;  %709 = vrcp.f32 %v950_v47 }
  0x5d   :  { %v231_v53 = vsub.f32 %v1791_v12, %v1123_v24  ;;  %v1138_v62 = vmin.f32 %v235_v25, -1.0000005e-06  ;;  %v243_v30 = vmax.f32 %v227_v52, -13.815511  ;;  %v244_v41 = vmax.f32 %v228_v44, -13.815511 }
  0x5e   :  { %v232_v26 = vsub.f32 %v1792_v57, %v199_v50  ;;  %v1142_v8 = vmin.f32 %v236_v6, -1.0000005e-06  ;;  %v1793_v46 = vmin.f32 %v893_v39, 0.0  ;;  %v245_v15 = vmax.f32 %v229_v63, -13.815511 }
  0x5f   :  { %v1146_v10 = vmin.f32 %v237_v60, -1.0000005e-06  ;;  %v1148_v59 = vmin.f32 %v238_v4, -1.0000005e-06  ;;  %v246_v12 = vmax.f32 %v230_v49, -13.815511  ;;  %711 = vrcp.f32 %v958_v51 }
  0x60   :  { %v233_v48 = vsub.f32 %v1793_v46, %v201_v13  ;;  %v1150_v32 = vmin.f32 %v239_v42, -1.0000005e-06  ;;  %v1152_v25 = vmin.f32 %v240_v16, -1.0000005e-06  ;;  %v1794_v54 = vmax.f32 %v853_v1, 0.0 }
  0x61   :  { %v247_v44 = vmax.f32 %v231_v53, -13.815511  ;;  %v1159_v6 = vmin.f32 %v241_v61, -1.0000005e-06  ;;  %v1161_v57 = vmin.f32 %v242_v58, -1.0000005e-06  ;;  %713 = vrcp.f32 %v968_v55 }
  0x62   :  { %v1157_v52 = vadd.f32 %v1794_v54, %v1072_v34  ;;  %v1796_v63 = vmax.f32 %v855_v2, 0.0  ;;  %v248_v60 = vmax.f32 %v232_v26, -13.815511  ;;  %v1168_v49 = vmin.f32 %v243_v30, -1.0000005e-06 }
  0x63   :  { %v1170_v42 = vmin.f32 %v244_v41, -1.0000005e-06  ;;  %v249_v16 = vmax.f32 %v233_v48, -13.815511  ;;  %v1173_v34 = vmin.f32 %v245_v15, -1.0000005e-06  ;;  %v1191_v30 = vadd.f32 %v1802_v33, %v1088_v19 }
  0x64   :  { %1795 = vst [vmem:[#allocation55_spill] sm:$0xff] %v1157_v52  ;;  %v1166_v4 = vadd.f32 %v1796_v63, %v1077_v21  ;;  %v1798_v53 = vmax.f32 %v857_v3, 0.0  ;;  %v1181_v58 = vmin.f32 %v246_v12, -1.0000005e-06  ;;  %v1800_v21 = vmax.f32 %v860_v5, 0.0  ;;  %v1826_v33 = vld [vmem:[#allocation30_spill] sm:$0xff] }
  0x65   :  { %1803 = vst [vmem:[#allocation59_spill] sm:$0xff] %v1191_v30  ;;  %v1804_v38 = vmax.f32 %v866_v9, 0.0  ;;  %v1209_v19 = vmin.f32 %v248_v60, -1.0000005e-06  ;;  %v1808_v43 = vmax.f32 %v872_v14, 0.0  ;;  %v1812_v47 = vmax.f32 %v878_v20, 0.0 }
  0x66   :  { %1797 = vst [vmem:[#allocation56_spill] sm:$0xff] %v1166_v4  ;;  %v1178_v61 = vadd.f32 %v1798_v53, %v1082_v40  ;;  %v1186_v26 = vadd.f32 %v1800_v21, %v1084_v22  ;;  %v1195_v40 = vmin.f32 %v247_v44, -1.0000005e-06  ;;  %v1806_v22 = vmax.f32 %v869_v11, 0.0 }
  0x67   :  { %v1200_v41 = vadd.f32 %v1804_v38, %v1090_v37  ;;  %v1214_v48 = vadd.f32 %v1808_v43, %v1097_v28  ;;  %v1810_v37 = vmax.f32 %v875_v17, 0.0  ;;  %v1228_v12 = vadd.f32 %v1812_v47, %v1105_v36  ;;  %v1828_v47 = vld [vmem:[#allocation38_spill] sm:$0xff] }
  0x68   :  { %1799 = vst [vmem:[#allocation57_spill] sm:$0xff] %v1178_v61  ;;  %1801 = vst [vmem:[#allocation58_spill] sm:$0xff] %v1186_v26  ;;  %v1205_v46 = vadd.f32 %v1806_v22, %v1095_v18  ;;  %v1223_v18 = vmin.f32 %v249_v16, -1.0000005e-06  ;;  %v1814_v28 = vmax.f32 %v881_v23, 0.0  ;;  %v1816_v51 = vmax.f32 %v884_v27, 0.0 }
  0x69   :  { %1805 = vst [vmem:[#allocation60_spill] sm:$0xff] %v1200_v41  ;;  %1809 = vst [vmem:[#allocation62_spill] sm:$0xff] %v1214_v48  ;;  %v1219_v15 = vadd.f32 %v1810_v37, %v1103_v45  ;;  %v1818_v44 = vmax.f32 %v887_v31, 0.0  ;;  %v1820_v36 = vmax.f32 %v890_v35, 0.0  ;;  %v1823_v55 = vmax.f32 %v893_v39, 0.0  ;;  %v1827_v22 = vld [vmem:[#allocation34_spill] sm:$0xff] }
  0x6a   :  { %1807 = vst [vmem:[#allocation61_spill] sm:$0xff] %v1205_v46  ;;  %1813 = vst [vmem:[#allocation64_spill] sm:$0xff] %v1228_v12  ;;  %v1233_v54 = vadd.f32 %v1814_v28, %v1109_v56  ;;  %v1240_v45 = vadd.f32 %v1816_v51, %v1117_v29  ;;  %v1822_v56 = vld [vmem:[#allocation26_spill] sm:$0xff]  ;;  %v704_v28 = vpop.eup %703  ;;  %v1867_v26 = vld [vmem:[#allocation36_spill] sm:$0xff] }
  0x6b   :  { %1811 = vst [vmem:[#allocation63_spill] sm:$0xff] %v1219_v15  ;;  %v1245_v63 = vadd.f32 %v1818_v44, %v1123_v24  ;;  %v1249_v60 = vadd.f32 %v1820_v36, %v199_v50  ;;  %715 = vrcp.f32 %v1822_v56  ;;  %v1255_v16 = vadd.f32 %v1823_v55, %v201_v13  ;;  %v1829_v56 = vld [vmem:[#allocation42_spill] sm:$0xff]  ;;  %v706_v55 = vpop.eup %705  ;;  %v1832_v13 = vld [vmem:[#allocation49_spill] sm:$0xff]  ;;  %v1836_v36 = vld [vmem:[#allocation51_spill] sm:$0xff] }
  0x6c   :  { %1815 = vst [vmem:[#allocation65_spill] sm:$0xff] %v1233_v54  ;;  %1817 = vst [vmem:[#allocation66_spill] sm:$0xff] %v1240_v45  ;;  %717 = vrcp.f32 %v1826_v33  ;;  %v1830_v37 = vld [vmem:[#allocation46_spill] sm:$0xff]  ;;  %v708_v51 = vpop.eup %707  ;;  %v1868_v61 = vld [vmem:[#allocation37_spill] sm:$0xff] }
  0x6d   :  { %1819 = vst [vmem:[#allocation67_spill] sm:$0xff] %v1245_v63  ;;  %1821 = vst [vmem:[#allocation68_spill] sm:$0xff] %v1249_v60  ;;  %719 = vrcp.f32 %v1827_v22  ;;  %v710_v33 = vpop.eup %709  ;;  %v1834_v50 = vld [vmem:[#allocation50_spill] sm:$0xff] }
  0x6e   :  { %1824 = vst [vmem:[#allocation26_spill] sm:$0xff] %v1255_v16  ;;  %721 = vrcp.f32 %v1828_v47  ;;  %v1831_v47 = vld [vmem:[#allocation11_spill] sm:$0xff]  ;;  %v712_v24 = vpop.eup %711  ;;  %v1842_v60 = vld [vmem:[#allocation18_spill] sm:$0xff] }
  0x6f   :  { %723 = vrcp.f32 %v1829_v56  ;;  %v346_v43 = vmul.f32 %v704_v28, %v1831_v47  ;;  %v1833_v56 = vld [vmem:[#allocation12_spill] sm:$0xff]  ;;  %v714_v29 = vpop.eup %713 }
  0x70   :  { %725 = vrcp.f32 %v1830_v37  ;;  %v347_v38 = vmul.f32 %v706_v55, %v1833_v56  ;;  %v1835_v37 = vld [vmem:[#allocation13_spill] sm:$0xff] }
  0x71   :  { %727 = vrcp.f32 %v1832_v13  ;;  %v348_v47 = vmul.f32 %v708_v51, %v1835_v37  ;;  %v362_v44 = vsel %vm330_vm0, %v704_v28, %v346_v43  ;;  %v1837_v13 = vld [vmem:[#allocation14_spill] sm:$0xff]  ;;  %v1839_v37 = vld [vmem:[#allocation15_spill] sm:$0xff] }
  0x72   :  { %729 = vrcp.f32 %v1834_v50  ;;  %v349_v21 = vmul.f32 %v710_v33, %v1837_v13  ;;  %v363_v56 = vsel %vm331_vm1, %v706_v55, %v347_v38  ;;  %v378_v22 = vmax.f32 %v362_v44, 1e-06  ;;  %v1838_v50 = vld [vmem:[#allocation52_spill] sm:$0xff] }
  0x73   :  { %731 = vrcp.f32 %v1836_v36  ;;  %v350_v16 = vmul.f32 %v712_v24, %v1839_v37  ;;  %v364_v0 = vsel %vm332_vm2, %v708_v51, %v348_v47  ;;  %v379_v43 = vmax.f32 %v363_v56, 1e-06  ;;  %v1840_v36 = vld [vmem:[#allocation16_spill] sm:$0xff] }
  0x74   :  { %733 = vrcp.f32 %v1838_v50  ;;  %v351_v13 = vmul.f32 %v714_v29, %v1840_v36  ;;  %v365_v1 = vsel %vm333_vm3, %v710_v33, %v349_v21  ;;  %v380_v38 = vmax.f32 %v364_v0, 1e-06  ;;  %v1841_v50 = vld [vmem:[#allocation17_spill] sm:$0xff]  ;;  %v1843_v0 = vld [vmem:[#allocation19_spill] sm:$0xff] }
  0x75   :  { %v716_v28 = vpop.eup %715  ;;  %v1306_v44 = vmin.f32 %v378_v22, 0.999999  ;;  %v366_v2 = vsel %vm334_vm4, %v712_v24, %v350_v16  ;;  %v381_v51 = vmax.f32 %v365_v1, 1e-06  ;;  %v1312_v47 = vmin.f32 %v379_v43, 0.999999 }
  0x76   :  { %v718_v55 = vpop.eup %717  ;;  %v352_v37 = vmul.f32 %v716_v28, %v1841_v50  ;;  %v367_v3 = vsel %vm335_vm5, %v714_v29, %v351_v13  ;;  %v382_v21 = vmax.f32 %v366_v2, 1e-06  ;;  %v1317_v33 = vmin.f32 %v380_v38, 0.999999  ;;  %v1844_v43 = vld [vmem:[#allocation20_spill] sm:$0xff]  ;;  %v1845_v38 = vld [vmem:[#allocation23_spill] sm:$0xff] }
  0x77   :  { %v720_v56 = vpop.eup %719  ;;  %v353_v36 = vmul.f32 %v718_v55, %v1842_v60  ;;  %v383_v5 = vmax.f32 %v367_v3, 1e-06  ;;  %v1322_v16 = vmin.f32 %v381_v51, 0.999999  ;;  %v1846_v51 = vld [vmem:[#allocation27_spill] sm:$0xff] }
  0x78   :  { %v722_v22 = vpop.eup %721  ;;  %v354_v63 = vmul.f32 %v720_v56, %v1843_v0  ;;  %v368_v50 = vsel %vm336_vm6, %v716_v28, %v352_v37  ;;  %v1327_v29 = vmin.f32 %v382_v21, 0.999999  ;;  %v1847_v21 = vld [vmem:[#allocation31_spill] sm:$0xff]  ;;  %v412_v31 = vsub.f32 1.0, %v1317_v33 }
  0x79   :  { %v724_v24 = vpop.eup %723  ;;  %v355_v1 = vmul.f32 %v722_v22, %v1844_v43  ;;  %v369_v60 = vsel %vm337_vm7, %v718_v55, %v353_v36  ;;  %v384_v7 = vmax.f32 %v368_v50, 1e-06  ;;  %v1332_v28 = vmin.f32 %v383_v5, 0.999999  ;;  %v1848_v5 = vld [vmem:[#allocation35_spill] sm:$0xff] }
  0x7a   :  { %v726_v13 = vpop.eup %725  ;;  %v356_v2 = vmul.f32 %v724_v24, %v1845_v38  ;;  %v370_v0 = vsel %vm338_vm8, %v720_v56, %v354_v63  ;;  %v385_v9 = vmax.f32 %v369_v60, 1e-06  ;;  %v414_v35 = vsub.f32 1.0, %v1327_v29 }
  0x7b   :  { %v728_v37 = vpop.eup %727  ;;  %v357_v3 = vmul.f32 %v726_v13, %v1846_v51  ;;  %v371_v43 = vsel %vm339_vm9, %v722_v22, %v355_v1  ;;  %v386_v11 = vmax.f32 %v370_v0, 1e-06  ;;  %v1337_v55 = vmin.f32 %v384_v7, 0.999999  ;;  %v1849_v7 = vld [vmem:[#allocation39_spill] sm:$0xff] }
  0x7c   :  { %v730_v36 = vpop.eup %729  ;;  %v358_v50 = vmul.f32 %v728_v37, %v1847_v21  ;;  %v372_v38 = vsel %vm340_vm10, %v724_v24, %v356_v2  ;;  %v387_v14 = vmax.f32 %v371_v43, 1e-06  ;;  %v1342_v63 = vmin.f32 %v385_v9, 0.999999  ;;  %v1850_v24 = vld [vmem:[#allocation43_spill] sm:$0xff] }
  0x7d   :  { %v732_v56 = vpop.eup %731  ;;  %v359_v60 = vmul.f32 %v730_v36, %v1848_v5  ;;  %v373_v51 = vsel %vm341_vm11, %v726_v13, %v357_v3  ;;  %v388_v17 = vmax.f32 %v372_v38, 1e-06  ;;  %v402_v22 = vmin.f32 %v386_v11, 0.999999 }
  0x7e   :  { %v734_v1 = vpop.eup %733  ;;  %v360_v0 = vmul.f32 %v732_v56, %v1849_v7  ;;  %v374_v21 = vsel %vm342_vm12, %v728_v37, %v358_v50  ;;  %v389_v45 = vmax.f32 %v373_v51, 1e-06  ;;  %v403_v20 = vmin.f32 %v387_v14, 0.999999 }
  0x7f   :  { %v361_v2 = vmul.f32 %v734_v1, %v1850_v24  ;;  %v375_v9 = vsel %vm343_vm13, %v730_v36, %v359_v60  ;;  %v390_v43 = vmax.f32 %v374_v21, 1e-06  ;;  %v404_v5 = vmin.f32 %v388_v17, 0.999999 }
  0x80   :  { %v376_v23 = vsel %vm344_vm14, %v732_v56, %v360_v0  ;;  %v391_v13 = vmax.f32 %v375_v9, 1e-06  ;;  %v405_v3 = vmin.f32 %v389_v45, 0.999999  ;;  %v410_v11 = vsub.f32 1.0, %v1306_v44 }
  0x81   :  { %v377_v27 = vsel %vm345_vm15, %v734_v1, %v361_v2  ;;  %v392_v37 = vmax.f32 %v376_v23, 1e-06  ;;  %v406_v50 = vmin.f32 %v390_v43, 0.999999  ;;  %v411_v38 = vsub.f32 1.0, %v1312_v47 }
  0x82   :  { %v393_v14 = vmax.f32 %v377_v27, 1e-06  ;;  %v407_v51 = vmin.f32 %v391_v13, 0.999999  ;;  %v413_v36 = vsub.f32 1.0, %v1322_v16  ;;  %v415_v45 = vsub.f32 1.0, %v1332_v28 }
  0x83   :  { %v408_v60 = vmin.f32 %v392_v37, 0.999999  ;;  %v416_v56 = vsub.f32 1.0, %v1337_v55  ;;  %v417_v39 = vsub.f32 1.0, %v1342_v63  ;;  %v418_v1 = vsub.f32 1.0, %v402_v22 }
  0x84   :  { %v409_v17 = vmin.f32 %v393_v14, 0.999999  ;;  %v419_v7 = vsub.f32 1.0, %v403_v20  ;;  %v420_v0 = vsub.f32 1.0, %v404_v5  ;;  %v421_v21 = vsub.f32 1.0, %v405_v3 }
  0x85   :  { %v422_v24 = vsub.f32 1.0, %v406_v50  ;;  %v423_v2 = vsub.f32 1.0, %v407_v51  ;;  %v424_v9 = vsub.f32 1.0, %v408_v60  ;;  %v1365_v23 = vmul.f32 %v410_v11, %v410_v11 }
  0x86   :  { %v425_v43 = vsub.f32 1.0, %v409_v17  ;;  %v1367_v13 = vmul.f32 %v411_v38, %v411_v38  ;;  %v1369_v27 = vmul.f32 %v412_v31, %v412_v31  ;;  %v1371_v37 = vmul.f32 %v413_v36, %v413_v36 }
  0x87   :  { %v1373_v54 = vmul.f32 %v414_v35, %v414_v35  ;;  %v1375_v14 = vmul.f32 %v415_v45, %v415_v45  ;;  %v1377_v12 = vmul.f32 %v416_v56, %v416_v56  ;;  %v1379_v15 = vmul.f32 %v417_v39, %v417_v39 }
  0x88   :  { %v1381_v48 = vmul.f32 %v418_v1, %v418_v1  ;;  %v1383_v46 = vmul.f32 %v419_v7, %v419_v7  ;;  %v1385_v11 = vmul.f32 %v420_v0, %v420_v0  ;;  %v1387_v38 = vmul.f32 %v421_v21, %v421_v21  ;;  %v1851_v21 = vld [vmem:[#allocation21_spill] sm:$0xff] }
  0x89   :  { %v1389_v31 = vmul.f32 %v422_v24, %v422_v24  ;;  %v1391_v36 = vmul.f32 %v423_v2, %v423_v2  ;;  %v1393_v35 = vmul.f32 %v424_v9, %v424_v9  ;;  %v1395_v45 = vmul.f32 %v425_v43, %v425_v43  ;;  %v1857_v2 = vld [vmem:[#allocation24_spill] sm:$0xff]  ;;  %v1860_v43 = vld [vmem:[#allocation29_spill] sm:$0xff] }
  0x8a   :  { %v1399_v56 = vmul.f32 %v1306_v44, %v1306_v44  ;;  %v1403_v39 = vmul.f32 %v1312_v47, %v1312_v47  ;;  %v1407_v1 = vmul.f32 %v1317_v33, %v1317_v33  ;;  %v1411_v7 = vmul.f32 %v1322_v16, %v1322_v16  ;;  %v1852_v47 = vld [vmem:[#allocation22_spill] sm:$0xff]  ;;  %v1859_v9 = vld [vmem:[#allocation28_spill] sm:$0xff] }
  0x8b   :  { %v1415_v0 = vmul.f32 %v1327_v29, %v1327_v29  ;;  %v1419_v44 = vmul.f32 %v1332_v28, %v1332_v28  ;;  %vm458_vm0 = vcmp.eq.f32.partialorder %v1851_v21, 1.0  ;;  %vm459_vm1 = vcmp.eq.f32.partialorder %v1852_v47, 1.0  ;;  %v1858_v28 = vld [vmem:[#allocation25_spill] sm:$0xff] }
  0x8c   :  { %v1425_v33 = vmul.f32 %v1337_v55, %v1337_v55  ;;  %v1429_v16 = vmul.f32 %v1342_v63, %v1342_v63  ;;  %v1431_v24 = vmul.f32 %v402_v22, %v402_v22  ;;  %v1433_v29 = vmul.f32 %v403_v20, %v403_v20  ;;  %v1865_v22 = vld [vmem:[#allocation32_spill] sm:$0xff]  ;;  %v1866_v20 = vld [vmem:[#allocation33_spill] sm:$0xff] }
  0x8d   :  { %vm460_vm2 = vcmp.eq.f32.partialorder %v1857_v2, 1.0  ;;  %vm461_vm3 = vcmp.eq.f32.partialorder %v1858_v28, 1.0  ;;  %vm462_vm4 = vcmp.eq.f32.partialorder %v1859_v9, 1.0  ;;  %vm463_vm5 = vcmp.eq.f32.partialorder %v1860_v43, 1.0 }
  0x8e   :  { %1853 = vst [vmem:[#allocation30_spill] sm:$0xff] %v1425_v33  ;;  %1854 = vst [vmem:[#allocation34_spill] sm:$0xff] %v1429_v16  ;;  %v1439_v41 = vmul.f32 %v404_v5, %v404_v5  ;;  %v1441_v55 = vmul.f32 %v405_v3, %v405_v3  ;;  %v1443_v30 = vmul.f32 %v406_v50, %v406_v50  ;;  %vm464_vm6 = vcmp.eq.f32.partialorder %v1865_v22, 1.0  ;;  %v1871_v5 = vld [vmem:[#allocation40_spill] sm:$0xff]  ;;  %v1872_v3 = vld [vmem:[#allocation41_spill] sm:$0xff] }
  0x8f   :  { %1855 = vst [vmem:[#allocation38_spill] sm:$0xff] %v1431_v24  ;;  %1856 = vst [vmem:[#allocation42_spill] sm:$0xff] %v1433_v29  ;;  %v1445_v63 = vmul.f32 %v407_v51, %v407_v51  ;;  %vm465_vm7 = vcmp.eq.f32.partialorder %v1866_v20, 1.0  ;;  %vm466_vm8 = vcmp.eq.f32.partialorder %v1867_v26, 1.0  ;;  %vm467_vm9 = vcmp.eq.f32.partialorder %v1868_v61, 1.0  ;;  %v1873_v50 = vld [vmem:[#allocation44_spill] sm:$0xff] }
  0x90   :  { %1861 = vst [vmem:[#allocation46_spill] sm:$0xff] %v1439_v41  ;;  %1862 = vst [vmem:[#allocation11_spill] sm:$0xff] %v1441_v55  ;;  %v1451_v4 = vmul.f32 %v408_v60, %v408_v60  ;;  %v1453_v52 = vmul.f32 %v409_v17, %v409_v17  ;;  %vm468_vm10 = vcmp.eq.f32.partialorder %v1871_v5, 1.0  ;;  %vm469_vm11 = vcmp.eq.f32.partialorder %v1872_v3, 1.0  ;;  %v1874_v51 = vld [vmem:[#allocation45_spill] sm:$0xff]  ;;  %v1876_v55 = vld [vmem:[#allocation48_spill] sm:$0xff] }
  0x91   :  { %1863 = vst [vmem:[#allocation49_spill] sm:$0xff] %v1443_v30  ;;  %1864 = vst [vmem:[#allocation12_spill] sm:$0xff] %v1445_v63  ;;  %vm470_vm12 = vcmp.eq.f32.partialorder %v1873_v50, 1.0  ;;  %vm471_vm13 = vcmp.eq.f32.partialorder %v1874_v51, 1.0  ;;  %v474_v53 = vsub.f32 0.0, %v1365_v23  ;;  %v475_v63 = vsub.f32 0.0, %v1367_v13 }
  0x92   :  { %1869 = vst [vmem:[#allocation50_spill] sm:$0xff] %v1451_v4  ;;  %1870 = vst [vmem:[#allocation13_spill] sm:$0xff] %v1453_v52  ;;  %v1875_v30 = vld [vmem:[#allocation47_spill] sm:$0xff]  ;;  %vm473_vm15 = vcmp.eq.f32.partialorder %v1876_v55, 1.0  ;;  %v476_v60 = vsub.f32 0.0, %v1369_v27  ;;  %v477_v17 = vsub.f32 0.0, %v1371_v37 }
  0x93   :  { %vm472_vm14 = vcmp.eq.f32.partialorder %v1875_v30, 1.0  ;;  %v478_v52 = vsub.f32 0.0, %v1373_v54  ;;  %v479_v4 = vsub.f32 0.0, %v1375_v14  ;;  %v480_v41 = vsub.f32 0.0, %v1377_v12  ;;  %v1877_v33 = vld [vmem:[#allocation54_spill] sm:$0xff] }
  0x94   :  { %v481_v29 = vsub.f32 0.0, %v1379_v15  ;;  %v482_v23 = vsub.f32 0.0, %v1381_v48  ;;  %v483_v13 = vsub.f32 0.0, %v1383_v46  ;;  %v484_v24 = vsub.f32 0.0, %v1385_v11 }
  0x95   :  { %v485_v16 = vsub.f32 0.0, %v1387_v38  ;;  %v486_v27 = vsub.f32 0.0, %v1389_v31  ;;  %v487_v37 = vsub.f32 0.0, %v1391_v36  ;;  %v488_v54 = vsub.f32 0.0, %v1393_v35 }
  0x96   :  { %v489_v14 = vsub.f32 0.0, %v1395_v45  ;;  %v490_v12 = vmul.f32 %v474_v53, %v1877_v33  ;;  %v491_v15 = vmul.f32 %v475_v63, %v1138_v62  ;;  %v492_v48 = vmul.f32 %v476_v60, %v1142_v8 }
  0x97   :  { %v493_v46 = vmul.f32 %v477_v17, %v1146_v10  ;;  %v494_v11 = vmul.f32 %v478_v52, %v1148_v59  ;;  %v495_v38 = vmul.f32 %v479_v4, %v1150_v32  ;;  %v496_v31 = vmul.f32 %v480_v41, %v1152_v25 }
  0x98   :  { %v497_v36 = vmul.f32 %v481_v29, %v1159_v6  ;;  %v498_v35 = vmul.f32 %v482_v23, %v1161_v57  ;;  %v499_v45 = vmul.f32 %v483_v13, %v1168_v49  ;;  %v500_v53 = vmul.f32 %v484_v24, %v1170_v42 }
  0x99   :  { %v501_v62 = vmul.f32 %v485_v16, %v1173_v34  ;;  %v502_v8 = vmul.f32 %v486_v27, %v1181_v58  ;;  %v503_v10 = vmul.f32 %v487_v37, %v1195_v40  ;;  %v504_v59 = vmul.f32 %v488_v54, %v1209_v19  ;;  %v1883_v27 = vld [vmem:[#allocation30_spill] sm:$0xff] }
  0x9a   :  { %v505_v32 = vmul.f32 %v489_v14, %v1223_v18  ;;  %v1495_v25 = vsel %vm458_vm0, %v490_v12, 0.0  ;;  %v1499_v52 = vsel %vm459_vm1, %v491_v15, 0.0  ;;  %v1503_v6 = vsel %vm460_vm2, %v492_v48, 0.0  ;;  %v1884_v54 = vld [vmem:[#allocation34_spill] sm:$0xff] }
  0x9b   :  { %v1507_v57 = vsel %vm461_vm3, %v493_v46, 0.0  ;;  %v1511_v4 = vsel %vm462_vm4, %v494_v11, 0.0  ;;  %v1515_v49 = vsel %vm463_vm5, %v495_v38, 0.0  ;;  %vm522_vm0 = vcmp.eq.f32.partialorder %v1851_v21, 0.0  ;;  %v1885_v12 = vld [vmem:[#allocation38_spill] sm:$0xff]  ;;  %v1888_v11 = vld [vmem:[#allocation11_spill] sm:$0xff] }
  0x9c   :  { %vm523_vm1 = vcmp.eq.f32.partialorder %v1852_v47, 0.0  ;;  %v1521_v42 = vsel %vm464_vm6, %v496_v31, 0.0  ;;  %v1525_v34 = vsel %vm465_vm7, %v497_v36, 0.0  ;;  %v1529_v58 = vsel %vm466_vm8, %v498_v35, 0.0  ;;  %v1886_v15 = vld [vmem:[#allocation42_spill] sm:$0xff]  ;;  %v1889_v31 = vld [vmem:[#allocation49_spill] sm:$0xff] }
  0x9d   :  { %v1533_v40 = vsel %vm467_vm9, %v499_v45, 0.0  ;;  %vm524_vm2 = vcmp.eq.f32.partialorder %v1857_v2, 0.0  ;;  %vm525_vm3 = vcmp.eq.f32.partialorder %v1858_v28, 0.0  ;;  %vm526_vm4 = vcmp.eq.f32.partialorder %v1859_v9, 0.0  ;;  %v1887_v48 = vld [vmem:[#allocation46_spill] sm:$0xff]  ;;  %v1890_v36 = vld [vmem:[#allocation12_spill] sm:$0xff] }
  0x9e   :  { %vm527_vm5 = vcmp.eq.f32.partialorder %v1860_v43, 0.0  ;;  %v1541_v41 = vsel %vm468_vm10, %v500_v53, 0.0  ;;  %v1545_v19 = vsel %vm469_vm11, %v501_v62, 0.0  ;;  %v1549_v18 = vsel %vm470_vm12, %v502_v8, 0.0  ;;  %v1891_v35 = vld [vmem:[#allocation50_spill] sm:$0xff]  ;;  %v1892_v45 = vld [vmem:[#allocation13_spill] sm:$0xff] }
  0x9f   :  { %1878 = vst [vmem:[#allocation51_spill] sm:$0xff] %v1545_v19  ;;  %1879 = vst [vmem:[#allocation14_spill] sm:$0xff] %v1549_v18  ;;  %v1553_v33 = vsel %vm471_vm13, %v503_v10, 0.0  ;;  %vm528_vm6 = vcmp.eq.f32.partialorder %v1865_v22, 0.0  ;;  %vm529_vm7 = vcmp.eq.f32.partialorder %v1866_v20, 0.0  ;;  %vm530_vm8 = vcmp.eq.f32.partialorder %v1867_v26, 0.0 }
  0xa0   :  { %1880 = vst [vmem:[#allocation52_spill] sm:$0xff] %v1553_v33  ;;  %v1561_v16 = vsel %vm472_vm14, %v504_v59, 0.0  ;;  %v1565_v24 = vsel %vm473_vm15, %v505_v32, 0.0  ;;  %vm532_vm10 = vcmp.eq.f32.partialorder %v1871_v5, 0.0  ;;  %vm533_vm11 = vcmp.eq.f32.partialorder %v1872_v3, 0.0  ;;  %v1893_v53 = vld [vmem:[#allocation53_spill] sm:$0xff] }
  0xa1   :  { %1881 = vst [vmem:[#allocation15_spill] sm:$0xff] %v1561_v16  ;;  %1882 = vst [vmem:[#allocation16_spill] sm:$0xff] %v1565_v24  ;;  %vm534_vm12 = vcmp.eq.f32.partialorder %v1873_v50, 0.0  ;;  %vm535_vm13 = vcmp.eq.f32.partialorder %v1874_v51, 0.0  ;;  %v538_v29 = vmul.f32 -1.0, %v1399_v56  ;;  %v539_v63 = vmul.f32 -1.0, %v1403_v39 }
  0xa2   :  { %vm536_vm9 = vcmp.eq.f32.partialorder %v1875_v30, 0.0  ;;  %vm537_vm14 = vcmp.eq.f32.partialorder %v1876_v55, 0.0  ;;  %v540_v60 = vmul.f32 -1.0, %v1407_v1  ;;  %v541_v17 = vmul.f32 -1.0, %v1411_v7  ;;  %v1895_v10 = vld [vmem:[#allocation55_spill] sm:$0xff]  ;;  %v1901_v24 = vld [vmem:[#allocation58_spill] sm:$0xff] }
  0xa3   :  { %v542_v23 = vmul.f32 -1.0, %v1415_v0  ;;  %v543_v13 = vmul.f32 -1.0, %v1419_v44  ;;  %v544_v37 = vmul.f32 -1.0, %v1883_v27  ;;  %v545_v14 = vmul.f32 -1.0, %v1884_v54  ;;  %v1897_v27 = vld [vmem:[#allocation56_spill] sm:$0xff] }
  0xa4   :  { %v546_v56 = vmul.f32 -1.0, %v1885_v12  ;;  %v547_v39 = vmul.f32 -1.0, %v1886_v15  ;;  %v548_v46 = vmul.f32 -1.0, %v1887_v48  ;;  %v549_v38 = vmul.f32 -1.0, %v1888_v11  ;;  %v1899_v15 = vld [vmem:[#allocation57_spill] sm:$0xff]  ;;  %v1905_v18 = vld [vmem:[#allocation60_spill] sm:$0xff] }
  0xa5   :  { %v550_v1 = vmul.f32 -1.0, %v1889_v31  ;;  %v551_v7 = vmul.f32 -1.0, %v1890_v36  ;;  %v552_v0 = vmul.f32 -1.0, %v1891_v35  ;;  %v553_v44 = vmul.f32 -1.0, %v1892_v45  ;;  %v1903_v36 = vld [vmem:[#allocation59_spill] sm:$0xff] }
  0xa6   :  { %v1894_v62 = vsub.f32 0.0, %v1893_v53  ;;  %v1896_v59 = vsub.f32 0.0, %v1895_v10  ;;  %v1898_v54 = vsub.f32 0.0, %v1897_v27  ;;  %v1900_v48 = vsub.f32 0.0, %v1899_v15  ;;  %v1907_v53 = vld [vmem:[#allocation61_spill] sm:$0xff]  ;;  %v1909_v10 = vld [vmem:[#allocation62_spill] sm:$0xff] }
  0xa7   :  { %v1902_v31 = vsub.f32 0.0, %v1901_v24  ;;  %v1904_v33 = vsub.f32 0.0, %v1903_v36  ;;  %v1906_v45 = vsub.f32 0.0, %v1905_v18  ;;  %v1911_v27 = vld [vmem:[#allocation63_spill] sm:$0xff]  ;;  %v1913_v15 = vld [vmem:[#allocation64_spill] sm:$0xff]  ;;  %v1915_v24 = vld [vmem:[#allocation65_spill] sm:$0xff] }
  0xa8   :  { %v554_v8 = vmul.f32 %v538_v29, %v1894_v62  ;;  %v555_v32 = vmul.f32 %v539_v63, %v1896_v59  ;;  %v556_v12 = vmul.f32 %v540_v60, %v1898_v54  ;;  %v557_v11 = vmul.f32 %v541_v17, %v1900_v48  ;;  %v1917_v36 = vld [vmem:[#allocation66_spill] sm:$0xff]  ;;  %v1919_v18 = vld [vmem:[#allocation67_spill] sm:$0xff] }
  0xa9   :  { %v558_v16 = vmul.f32 %v542_v23, %v1902_v31  ;;  %v559_v35 = vmul.f32 %v543_v13, %v1904_v33  ;;  %v560_v19 = vmul.f32 %v544_v37, %v1906_v45  ;;  %v1908_v29 = vsub.f32 0.0, %v1907_v53  ;;  %v1921_v53 = vld [vmem:[#allocation68_spill] sm:$0xff] }
  0xaa   :  { %v1910_v63 = vsub.f32 0.0, %v1909_v10  ;;  %v1912_v60 = vsub.f32 0.0, %v1911_v27  ;;  %v1914_v17 = vsub.f32 0.0, %v1913_v15  ;;  %v1916_v23 = vsub.f32 0.0, %v1915_v24  ;;  %v1923_v10 = vld [vmem:[#allocation26_spill] sm:$0xff] }
  0xab   :  { %v561_v62 = vmul.f32 %v545_v14, %v1908_v29  ;;  %v1918_v33 = vsub.f32 0.0, %v1917_v36  ;;  %v1920_v37 = vsub.f32 0.0, %v1919_v18  ;;  %v1922_v14 = vsub.f32 0.0, %v1921_v53 }
  0xac   :  { %v562_v59 = vmul.f32 %v546_v56, %v1910_v63  ;;  %v563_v54 = vmul.f32 %v547_v39, %v1912_v60  ;;  %v564_v48 = vmul.f32 %v548_v46, %v1914_v17  ;;  %v565_v31 = vmul.f32 %v549_v38, %v1916_v23 }
  0xad   :  { %v566_v13 = vmul.f32 %v550_v1, %v1918_v33  ;;  %v567_v45 = vmul.f32 %v551_v7, %v1920_v37  ;;  %v568_v29 = vmul.f32 %v552_v0, %v1922_v14  ;;  %v1924_v56 = vsub.f32 0.0, %v1923_v10 }
  0xae   :  { %v570_v39 = vsel %vm522_vm0, %v554_v8, 0.0  ;;  %v571_v46 = vsel %vm523_vm1, %v555_v32, 0.0  ;;  %v572_v38 = vsel %vm524_vm2, %v556_v12, 0.0  ;;  %v573_v1 = vsel %vm525_vm3, %v557_v11, 0.0  ;;  %v1926_v32 = vld [vmem:[#allocation51_spill] sm:$0xff]  ;;  %v1927_v12 = vld [vmem:[#allocation14_spill] sm:$0xff] }
  0xaf   :  { %v569_v63 = vmul.f32 %v553_v44, %v1924_v56  ;;  %v574_v7 = vsel %vm526_vm4, %v558_v16, 0.0  ;;  %v575_v0 = vsel %vm527_vm5, %v559_v35, 0.0  ;;  %v576_v44 = vsel %vm528_vm6, %v560_v19, 0.0  ;;  %v1928_v11 = vld [vmem:[#allocation52_spill] sm:$0xff] }
  0xb0   :  { %v577_v21 = vsel %vm529_vm7, %v561_v62, 0.0  ;;  %v578_v47 = vsel %vm530_vm8, %v562_v59, 0.0  ;;  %vm1925_vm15 = vcmp.eq.f32.partialorder %v1868_v61, 0.0  ;;  %v580_v28 = vsel %vm532_vm10, %v564_v48, 0.0  ;;  %v1929_v62 = vld [vmem:[#allocation15_spill] sm:$0xff]  ;;  %v1930_v59 = vld [vmem:[#allocation16_spill] sm:$0xff] }
  0xb1   :  { %v579_v2 = vsel %vm1925_vm15, %v563_v54, 0.0  ;;  %v581_v9 = vsel %vm533_vm11, %v565_v31, 0.0  ;;  %v582_v43 = vsel %vm534_vm12, %v566_v13, 0.0  ;;  %v583_v22 = vsel %vm535_vm13, %v567_v45, 0.0 }
  0xb2   :  { %v584_v20 = vsel %vm536_vm9, %v568_v29, 0.0  ;;  %v585_v26 = vsel %vm537_vm14, %v569_v63, 0.0  ;;  %v586_v61 = vadd.f32 %v570_v39, %v1495_v25  ;;  %v587_v5 = vadd.f32 %v571_v46, %v1499_v52 }
  0xb3   :  { %v588_v19 = vadd.f32 %v572_v38, %v1503_v6  ;;  %v589_v3 = vadd.f32 %v573_v1, %v1507_v57  ;;  %v590_v50 = vadd.f32 %v574_v7, %v1511_v4  ;;  %v591_v16 = vadd.f32 %v575_v0, %v1515_v49 }
  0xb4   :  { %v592_v51 = vadd.f32 %v576_v44, %v1521_v42  ;;  %v593_v30 = vadd.f32 %v577_v21, %v1525_v34  ;;  %v594_v8 = vadd.f32 %v578_v47, %v1529_v58  ;;  %v595_v55 = vadd.f32 %v579_v2, %v1533_v40 }
  0xb5   :  { %v596_v25 = vadd.f32 %v580_v28, %v1541_v41  ;;  %v597_v52 = vadd.f32 %v581_v9, %v1926_v32  ;;  %v598_v6 = vadd.f32 %v582_v43, %v1927_v12  ;;  %v599_v57 = vadd.f32 %v583_v22, %v1928_v11 }
  0xb6   :  { %v602_v35 = vadd.f32 %v590_v50, %v586_v61  ;;  %v605_v4 = vadd.f32 %v591_v16, %v587_v5  ;;  %v600_v49 = vadd.f32 %v584_v20, %v1929_v62  ;;  %v601_v42 = vadd.f32 %v585_v26, %v1930_v59 }
  0xb7   :  { %v608_v27 = vadd.f32 %v592_v51, %v588_v19  ;;  %v611_v34 = vadd.f32 %v593_v30, %v589_v3 }
  0xb8   :  { %v603_v60 = vadd.f32 %v602_v35, %v594_v8  ;;  %v606_v58 = vadd.f32 %v605_v4, %v595_v55 }
  0xb9   :  { %v609_v40 = vadd.f32 %v608_v27, %v596_v25  ;;  %v612_v41 = vadd.f32 %v611_v34, %v597_v52 }
  0xba   :  { %v604_v54 = vadd.f32 %v603_v60, %v598_v6  ;;  %v607_v15 = vadd.f32 %v606_v58, %v599_v57 }
  0xbb   :  { %v610_v17 = vadd.f32 %v609_v40, %v600_v49  ;;  %v613_v48 = vadd.f32 %v612_v41, %v601_v42 }
  0xbc   :  { %614 = vst [vmem:[#allocation7] sm:$0xff] %v604_v54  ;;  %615 = vst [vmem:[#allocation7 + $0x8] sm:$0xff] %v607_v15 }
  0xbd   :  { %616 = vst [vmem:[#allocation7 + $0x10] sm:$0xff] %v610_v17  ;;  %617 = vst [vmem:[#allocation7 + $0x18] sm:$0xff] %v613_v48 }
  0xbe   :  { %790 = shalt.err (!%p787_p6)
}
  0xbf   :  { %s791_s10 = scalar_lea.hbm %s1683_s2, 512 }
  0xc0   :  { %p792_p7 = scmp.ne.s32.totalorder %s1683_s2, %s791_s10  ;;  %p795_p8 = scmp.lt.u32.totalorder %s791_s10, %s1683_s2 }
  0xc2   :  { %p797_p9 = pnand %p795_p8, %p792_p7 }
  0xc4   :  { %800 = shalt.err (!%p797_p9)
}
  0xc5   :  { %627 = dma.vmem_to_hbm [thread:$0]  %s625_s6, 512, %s1683_s2, [#allocation4]  }
  0xc6   :  { %805 = dma.done.wait [#allocation4], 512  }
  0xc7   :  { %806 = vsyncadd [#allocation4], 4294966784 }
  0xc8   :  { %631 = vsyncpa [#allocation3], 1 }
  0xc9   :  { %632 = vsyncpa [#allocation6], 1 }
  0xca   :  { %633 = vsyncpa [#allocation4], 1 }

</bundles_post_ra>
